<compile_context>
chip_gen: v6e
topology: v6e:2x2x1
jax: 0.10.0
libtpu: 0.0.40
codegen_flags: <defaults>
</compile_context>

<pallas_src>
import functools

import jax
import jax.numpy as jnp
from jax import lax
from jax.experimental import pallas as pl
from jax.experimental.pallas import tpu as pltpu


def _round_up(x: int, m: int) -> int:
    return ((x + m - 1) // m) * m


def _vmem_limit_bytes() -> int:
    """Per-generation scoped-VMEM budget with ~30% headroom."""
    try:
        cap = int(pltpu.get_tpu_info().vmem_capacity_bytes)
    except Exception:
        cap = 64 * 1024 * 1024            # v7x physical VMEM: most conservative
    return max(32 * 1024 * 1024, int(cap * 0.7))


# --------------------------------------------------------------------------- #
# Path A: small table resident in VMEM, one-hot @ table on the MXU.
# --------------------------------------------------------------------------- #
def _resident_kernel(idx_ref, e_ref, o_ref):
    """idx_ref: (block_n, 1) i32 | e_ref: (V, Dp) resident | o_ref: (block_n, Dp)."""
    idx = idx_ref[...]                                        # (block_n, 1)
    block_n = o_ref.shape[0]
    vocab = e_ref.shape[0]

    col_ids = lax.broadcasted_iota(jnp.int32, (block_n, vocab), 1)
    # bf16 one-hot on bf16 tables (MXU-native); 0/1 values are exact in bf16.
    onehot_dtype = (jnp.bfloat16
                    if jnp.dtype(e_ref.dtype) == jnp.dtype(jnp.bfloat16)
                    else jnp.float32)
    onehot = (col_ids == idx).astype(onehot_dtype)            # (block_n, V)

    # Row gather == onehot @ E on the MXU with f32 accumulation.  Exact for
    # one-hot operands even under multi-pass f32 lowering (see header comment).
    o_ref[...] = jnp.dot(
        onehot, e_ref[...], preferred_element_type=jnp.float32
    ).astype(o_ref.dtype)


# --------------------------------------------------------------------------- #
# Path B: table in HBM, per-row DMA gather with a bounded in-flight window.
# --------------------------------------------------------------------------- #
def _dma_gather_kernel(idx_smem, e_hbm, o_ref, gbuf, sem, *, depth):
    """idx_smem: (n_pad,) i32 SMEM | e_hbm: (V, Dp) HBM | o_ref/gbuf: (block_n, Dp)."""
    block_n = o_ref.shape[0]
    base = pl.program_id(0) * block_n

    def row_copy(r, slot):
        row = idx_smem[base + r]
        return pltpu.make_async_copy(
            e_hbm.at[pl.ds(row, 1), :],      # one table row (1, Dp) from HBM
            gbuf.at[pl.ds(r, 1), :],         # into the staging buffer
            sem.at[slot],
        )

    # Prime up to `depth` row fetches (static unrolled).
    for r in range(min(depth, block_n)):
        row_copy(r, r).start()

    @pl.loop(0, block_n)
    def _(r):
        slot = r % depth
        row_copy(r, slot).wait()

        @pl.when(r + depth < block_n)
        def _():
            row_copy(r + depth, slot).start()

    # All rows landed; publish the lane-dense output block.
    o_ref[...] = gbuf[...]


# --------------------------------------------------------------------------- #
# Wrapper
# --------------------------------------------------------------------------- #
@functools.partial(jax.jit, static_argnames=("method",))
def embedding_forward(E, idx, method=None):
    """Pallas equivalent of Embedding.forward: returns E[idx].

    E      : (V, D) float table
    idx    : integer array of any shape; output has shape idx.shape + (D,)
    method : None (auto), "resident", or "dma"
    """
    V, D = E.shape
    idx_shape = idx.shape
    itemsize = jnp.dtype(E.dtype).itemsize

    # Lane-dense last dim: pad D up to a multiple of 128 once (unmasked vst,
    # full MXU N lanes).  No-op when D is already a multiple of 128.
    Dp = max(128, _round_up(D, 128))
    E_p = E if Dp == D else jnp.pad(E, ((0, 0), (0, Dp - D)))

    # Clamp indices: PyTorch raises on OOB; clamping keeps the DMA path from
    # reading outside the table and the one-hot path from returning zeros.
    idx_flat = jnp.clip(idx.reshape(-1).astype(jnp.int32), 0, V - 1)
    n = idx_flat.shape[0]

    vmem_limit = _vmem_limit_bytes()
    table_bytes = V * Dp * itemsize

    if method is None:
        use_resident = (V <= 4096) and (2 * table_bytes <= vmem_limit // 3)
        method = "resident" if use_resident else "dma"
    if method not in ("resident", "dma"):
        raise ValueError(f"unknown method: {method!r}")

    # Index rows handled per grid step: multiple of 8 sublanes, <= ~4 MiB of
    # output block (safe when double-buffered on every generation), and on the
    # resident path additionally bounded by the (block_n, V) temporaries.
    max_by_out = max(8, ((4 << 20) // (Dp * itemsize)) // 8 * 8)
    caps = [1024, max_by_out, _round_up(n, 8)]
    if method == "resident":
        caps.append(max(8, ((1 << 20) // V) // 8 * 8))
    block_n = min(caps)
    n_pad = _round_up(n, block_n)
    if n_pad != n:
        idx_flat = jnp.pad(idx_flat, (0, n_pad - n))          # pad with valid index 0
    grid_steps = n_pad // block_n

    if method == "resident":
        idx_col = idx_flat.reshape(n_pad, 1)
        # With <=2 grid steps, "parallel" on v7x would duplicate the resident
        # table fetch on both TensorCores for no win.
        dims = ("arbitrary",) if grid_steps <= 2 else ("parallel",)
        out = pl.pallas_call(
            _resident_kernel,
            out_shape=jax.ShapeDtypeStruct((n_pad, Dp), E.dtype),
            grid_spec=pltpu.PrefetchScalarGridSpec(
                num_scalar_prefetch=0,
                grid=(grid_steps,),
                in_specs=[
                    pl.BlockSpec((block_n, 1), lambda i: (i, 0)),
                    # Full table, constant block index -> fetched once, resident.
                    pl.BlockSpec((V, Dp), lambda i: (0, 0)),
                ],
                out_specs=pl.BlockSpec((block_n, Dp), lambda i: (i, 0)),
            ),
            compiler_params=pltpu.CompilerParams(
                dimension_semantics=dims,
                vmem_limit_bytes=vmem_limit,
            ),
            cost_estimate=pl.CostEstimate(
                flops=int(2 * n_pad * V * Dp),
                transcendentals=0,
                bytes_accessed=int(V * Dp * itemsize
                                   + n_pad * Dp * itemsize
                                   + n_pad * 4),
            ),
        )(idx_col, E_p)
    else:  # "dma"
        depth = 8
        kernel = functools.partial(_dma_gather_kernel, depth=depth)
        out = pl.pallas_call(
            kernel,
            out_shape=jax.ShapeDtypeStruct((n_pad, Dp), E.dtype),
            grid_spec=pltpu.PrefetchScalarGridSpec(
                num_scalar_prefetch=1,                         # indices -> SMEM
                grid=(grid_steps,),
                in_specs=[pl.BlockSpec(memory_space=pl.ANY)],  # table stays in HBM
                out_specs=pl.BlockSpec((block_n, Dp), lambda i, _idx: (i, 0)),
                scratch_shapes=[
                    pltpu.VMEM((block_n, Dp), E.dtype),        # gather staging
                    pltpu.SemaphoreType.DMA((depth,)),
                ],
            ),
            compiler_params=pltpu.CompilerParams(
                dimension_semantics=("parallel",),
                vmem_limit_bytes=vmem_limit,
            ),
            cost_estimate=pl.CostEstimate(
                flops=0,
                transcendentals=0,
                bytes_accessed=int(2 * n_pad * Dp * itemsize + n_pad * 4),
            ),
        )(idx_flat, E_p)

    if n_pad != n or Dp != D:
        out = out[:n, :D]
    return out.reshape(*idx_shape, D)


def embedding_ref(E, idx):
    """Pure-JAX reference: E[idx]."""
    return jnp.take(E, idx, axis=0)


if __name__ == "__main__":
    key = jax.random.PRNGKey(0)
    k_e, k_i, k_e2, k_i2 = jax.random.split(key, 4)

    # Case 1: module-scale demo (vocab=32, embed=32, idx (batch=2, seq=8))
    # -> auto-selects the VMEM-resident one-hot path.
    vocab, embed = 32, 32
    E = jax.random.normal(k_e, (vocab, embed), dtype=jnp.float32) / jnp.sqrt(
        jnp.float32(vocab))
    idx = jax.random.randint(k_i, (2, 8), 0, vocab, dtype=jnp.int32)

    out = embedding_forward(E, idx)
    jax.block_until_ready(out)
    ref = embedding_ref(E, idx)
    assert out.shape == (2, 8, embed), out.shape
    assert out.dtype == E.dtype, out.dtype
    assert jnp.allclose(out, ref, atol=1e-6, rtol=1e-6)

    # Case 2: exercise the HBM/DMA gather path (the large-vocab production path)
    # at still-small shapes by forcing method="dma".
    vocab2, embed2 = 512, 128
    E2 = jax.random.normal(k_e2, (vocab2, embed2), dtype=jnp.float32) / jnp.sqrt(
        jnp.float32(vocab2))
    idx2 = jax.random.randint(k_i2, (2, 8), 0, vocab2, dtype=jnp.int32)

    out2 = embedding_forward(E2, idx2, method="dma")
    jax.block_until_ready(out2)
    ref2 = embedding_ref(E2, idx2)
    assert out2.shape == (2, 8, embed2), out2.shape
    assert jnp.allclose(out2, ref2)            # true gather is bit-exact

    print("KERNEL_OK")
</pallas_src>

<mosaic_0001>
module attributes {stable_mosaic.version = 11 : i64} {
  func.func @_resident_kernel(%arg0: i32, %arg1: memref<16x1xi32, #tpu.memory_space<vmem>>, %arg2: memref<32x128xf32, #tpu.memory_space<vmem>>, %arg3: memref<16x128xf32, #tpu.memory_space<vmem>>) attributes {dimension_semantics = [#tpu.dimension_semantics<arbitrary>], iteration_bounds = array<i64: 1>, scalar_prefetch = 0 : i64, scratch_operands = 0 : i64, tpu.core_type = #tpu.core_type<tc>, window_params = [{transform_indices = @transform_0, window_bounds = array<i64: 16, 1>}, {pipeline_mode = #tpu.pipeline_mode<synchronous>, transform_indices = @transform_1, window_bounds = array<i64: 32, 128>}, {transform_indices = @transform_2, window_bounds = array<i64: 16, 128>}]} {
    %c0 = arith.constant 0 : index
    %c0_0 = arith.constant 0 : index
    %0 = vector.load %arg1[%c0, %c0_0] : memref<16x1xi32, #tpu.memory_space<vmem>>, vector<16x1xi32>
    %1 = tpu.iota {dimensions = array<i32: 1>} : vector<16x32xi32>
    %2 = vector.broadcast %0 : vector<16x1xi32> to vector<16x32xi32>
    %3 = arith.cmpi eq, %1, %2 : vector<16x32xi32>
    %4 = arith.extui %3 : vector<16x32xi1> to vector<16x32xi32>
    %5 = arith.sitofp %4 : vector<16x32xi32> to vector<16x32xf32>
    %c0_1 = arith.constant 0 : index
    %c0_2 = arith.constant 0 : index
    %6 = vector.load %arg2[%c0_1, %c0_2] : memref<32x128xf32, #tpu.memory_space<vmem>>, vector<32x128xf32>
    %cst = arith.constant dense<0.000000e+00> : vector<16x128xf32>
    %7 = tpu.matmul %5, %6, %cst {dimension_numbers = #tpu.dot_dimension_numbers<[1], [0], [0], [1], [0, 0, 1, 1], [], []>} : vector<16x32xf32>, vector<32x128xf32>, vector<16x128xf32> -> vector<16x128xf32>
    %c0_3 = arith.constant 0 : index
    %c0_4 = arith.constant 0 : index
    %8 = vector.load %arg3[%c0_3, %c0_4] : memref<16x128xf32, #tpu.memory_space<vmem>>, vector<16x128xf32>
    tpu.vector_store %arg3[%c0_3, %c0_4], %7 {strides = array<i32>} : memref<16x128xf32, #tpu.memory_space<vmem>>, vector<16x128xf32>,
    return
  }
  func.func @transform_0(%arg0: i32) -> (i32, i32) {
    %c0_i32 = arith.constant 0 : i32
    %c0_i32_0 = arith.constant 0 : i32
    return %arg0, %c0_i32 : i32, i32
  }
  func.func @transform_1(%arg0: i32) -> (i32, i32) {
    %c0_i32 = arith.constant 0 : i32
    %c0_i32_0 = arith.constant 0 : i32
    %c0_i32_1 = arith.constant 0 : i32
    return %c0_i32, %c0_i32_0 : i32, i32
  }
  func.func @transform_2(%arg0: i32) -> (i32, i32) {
    %c0_i32 = arith.constant 0 : i32
    %c0_i32_0 = arith.constant 0 : i32
    return %arg0, %c0_i32 : i32, i32
  }
}

</mosaic_0001>

<bundles_post_ra>
// kernel: embedding_forward.1
= control target key start
LH: loop header
LB: loop body
LE: loop exit
PB: predicated region body
PF: predicated region fallthrough
CT: control target
= control target key end

     0   :  { %v143_v0 = vmov 0   ;;  %v13_v7 = vlaneseq  ;;  %vm31_vm0 = vcmask 261120   ;;  %v144_v10 = vmov 0.0   ;;  %s184_s0 = inlined_call_operand.vmem [shape: s32[16,1], index: 0, kind: input, shape index: {}]   ;;  %s185_s1 = inlined_call_operand.vmem [shape: f32[32,128], index: 1, kind: input, shape index: {}]   ;;  %s186_s2 = inlined_call_operand.vmem [shape: f32[16,128], index: 2, kind: output, shape index: {}]  }
   0x1   :  { %142 = vset.pattern.permute.xlu0 %v143_v0  ;;  %v11_v1 = vld [vmem:[%s184_s0] sm:$0xff]  ;;  %v30_v2 = vld [vmem:[%s185_s1 + $0x18] sm:$0xff]  ;;  %v29_v3 = vld [vmem:[%s185_s1 + $0x10] sm:$0xff] }
   0x2   :  { %16 = vperm.xlu0 %142, %v11_v1   ;;  %129 = vmatprep.subr.mxu0 %v30_v2  ;;  %v12_v4 = vld [vmem:[%s184_s0 + $0x8] sm:$0xff]  ;;  %v27_v6 = vld [vmem:[%s185_s1] sm:$0xff]  ;;  %v14_v8 = vand.u32 127, %v13_v7 }
   0x3   :  { %130 = vmatpush3.msra.mxu0 %v30_v2  ;;  %v28_v5 = vld [vmem:[%s185_s1 + $0x8] sm:$0xff] }
   0x4   :  { %131 = vmatprep.subr.mxu0 %v29_v3 }
   0x5   :  { %132 = vmatpush3.msra.mxu0 %v29_v3 }
   0x6   :  { %19 = vperm.xlu0 %142, %v12_v4   ;;  %133 = vmatprep.subr.mxu0 %v28_v5 }
   0x7   :  { %134 = vmatpush3.msra.mxu0 %v28_v5 }
   0x8   :  { %135 = vmatprep.subr.mxu0 %v27_v6 }
   0x9   :  { %136 = vmatpush3.msra.mxu0 %v27_v6 }
  0x7d   :  { %v17_v9 = vpop.permute.xlu0 %16 }
  0x7e   :  { %vm21_vm1 = vcmp.eq.s32.totalorder %v14_v8, %v17_v9 }
  0x7f   :  { %v119_v11 = vsel %vm21_vm1, 1.0, %v144_v10 }
  0x80   :  { %137 = vmatprep.mubr.msk.f32.mxu0 %vm31_vm0, %v119_v11 }
  0x81   :  { %v20_v12 = vpop.permute.xlu0 %19 }
  0x82   :  { %vm22_vm2 = vcmp.eq.s32.totalorder %v14_v8, %v20_v12 }
  0x83   :  { %v120_v13 = vsel %vm22_vm2, 1.0, %v144_v10 }
  0x84   :  { %138 = vmatmul.mubr.msk.f32.vlgmr.msra.gmra.mxu0 %vm31_vm0, %v120_v13 }
 0x144   :  { %v139_v14 = vpop.f32.mrf.mxu0 }
 0x145   :  { %114 = vst [vmem:[%s186_s2 + $0x8] sm:$0xff] %v139_v14 }
 0x146   :  { %v104_v15 = vpop.f32.mrf.mxu0 }
 0x147   :  { %113 = vst [vmem:[%s186_s2] sm:$0xff] %v104_v15 }

</bundles_post_ra>
